<compile_context>
chip_gen: v5e
topology: v5e:2x2
jax: 0.10.0
libtpu: 0.0.40
codegen_flags: <defaults>
</compile_context>

<pallas_src>
import functools

import jax
import jax.numpy as jnp
from jax import lax
from jax.experimental import pallas as pl
from jax.experimental.pallas import tpu as pltpu


def _make_kernel(kh, kw, stride, wp, hwp, c_in, c_pad, c_out, b_blk):
    taps = kh * kw
    s = stride

    def kernel(x_ref, w_ref, b_ref, o_ref, col_ref):
        # x_ref  : (b_blk, c_in, flat_len)   zero-padded images, spatial flattened in lanes
        # w_ref  : (c_out, taps*c_pad)       merged depthwise*pointwise weights (2-D)
        # b_ref  : (c_out, 1)                merged bias (b_pw + w_pw @ b_dw)
        # o_ref  : (b_blk, c_out, hwp)       wide outputs: h_out rows with pitch wp
        # col_ref: (taps*c_pad, hwp)         im2col staging slab (VMEM scratch)
        if c_pad != c_in:
            # Keep the c_in..c_pad alignment-padding rows zero (they meet zero weight
            # columns); the data rows below are fully overwritten every image.
            col_ref[...] = jnp.zeros_like(col_ref)

        w2d = w_ref[...]            # hoist weight / bias loads out of the image loop
        bias = b_ref[...]

        for b in range(b_blk):
            # Stage the kh*kw shifted windows into the im2col slab.  Each tap group
            # starts at a multiple of 8 sublanes -> aligned, unmasked-friendly stores.
            for di in range(kh):
                for dj in range(kw):
                    t = di * kw + dj
                    k0 = di * wp + dj                       # static lane offset of this tap
                    if s == 1:
                        patch = x_ref[b, :, pl.ds(k0, hwp)]
                    else:
                        patch = x_ref[b, :, pl.ds(k0, hwp, stride=s)]
                    col_ref[pl.ds(t * c_pad, c_in), :] = patch

            # Fused depthwise+pointwise conv as ONE MXU matmul, K = taps*c_pad.
            # Default precision matches the f32 reference to 1e-4 at these channel counts;
            # for strict f32 parity at large K use precision=lax.Precision.HIGHEST.
            acc = jnp.dot(w2d, col_ref[...], preferred_element_type=jnp.float32)
            o_ref[b] = acc + bias                           # lane-dense (c_out, hwp) store

    return kernel


@functools.partial(
    jax.jit,
    static_argnames=("kernel_size", "padding", "stride", "batch_block", "compute_dtype"))
def depthwise_conv2d(x_nchw, w_dw, b_dw, w_pw, b_pw, *,
                     kernel_size, padding, stride,
                     batch_block=None, compute_dtype=jnp.float32):
    """Forward pass of DepthWiseConv2d (depthwise kxk conv + pointwise 1x1 conv).

    x_nchw : (N, C_in, H, W) float32
    w_dw   : (C_in, kh, kw)   depthwise weights (torch (C_in,1,kh,kw) squeezed)
    b_dw   : (C_in,)          depthwise bias
    w_pw   : (C_out, C_in)    pointwise weights (torch (C_out,C_in,1,1) squeezed)
    b_pw   : (C_out,)         pointwise bias
    returns: (N, C_out, H_out, W_out) float32
    """
    n, c_in, h, w = x_nchw.shape
    kh = kw = kernel_size
    p, s = padding, stride
    c_out = w_pw.shape[0]
    taps = kh * kw

    h_out = (h + 2 * p - kh) // s + 1
    w_out = (w + 2 * p - kw) // s + 1

    wp = w + 2 * p                   # padded row pitch (lane dim of the flattened image)
    hwp = h_out * wp                 # per-image wide output width (incl. discard columns)
    c_pad = -(-c_in // 8) * 8        # 8-sublane alignment of each tap group in the slab

    # Flattened per-image length so every tap window (including the harmless reads landing
    # in discard columns) stays in-bounds.
    l_min = (kh - 1) * wp + (kw - 1) + s * (hwp - 1) + 1
    hp_ext = max(h + 2 * p, -(-l_min // wp))
    flat_len = hp_ext * wp

    # Images per grid step: keep >= 2 grid steps (both v7x TensorCores busy) while
    # amortizing the per-step overhead at larger batches; must divide n exactly.
    if batch_block is None:
        batch_block = max(1, n // 2)
    b_blk = next(d for d in range(min(batch_block, n), 0, -1) if n % d == 0)

    # Zero-pad in NCHW (no transposes) + layout-preserving reshape to (N, C, L).
    # allow_input_fusion below lets XLA fuse this producer into the pallas_call input
    # instead of round-tripping a padded copy through HBM.
    x = x_nchw.astype(compute_dtype)
    x = jnp.pad(x, ((0, 0), (0, 0), (p, hp_ext - h - p), (p, wp - w - p)))
    x_flat = x.reshape(n, c_in, flat_len)

    # Merged weights pre-reshaped to 2-D for the single im2col matmul:
    #   w2d[o, t*c_pad + c] = w_pw[o, c] * w_dw[c, di, dj],  t = di*kw + dj,  c < c_in
    # (columns c_in..c_pad of each tap group are zero and meet zero rows in the slab).
    wdw_t = w_dw.reshape(c_in, taps).T.astype(jnp.float32)             # (taps, c_in)
    wm = wdw_t[:, None, :] * w_pw.astype(jnp.float32)[None, :, :]      # (taps, c_out, c_in)
    w2d = jnp.zeros((c_out, taps, c_pad), jnp.float32)
    w2d = w2d.at[:, :, :c_in].set(jnp.transpose(wm, (1, 0, 2)))
    w2d = w2d.reshape(c_out, taps * c_pad).astype(compute_dtype)
    # Depthwise bias folded through the pointwise conv into one merged bias.
    b_eff = (b_pw.astype(jnp.float32)
             + w_pw.astype(jnp.float32) @ b_dw.astype(jnp.float32)).reshape(c_out, 1)

    kernel = _make_kernel(kh, kw, s, wp, hwp, c_in, c_pad, c_out, b_blk)

    out_wide = pl.pallas_call(
        kernel,
        out_shape=jax.ShapeDtypeStruct((n, c_out, hwp), jnp.float32),
        grid=(n // b_blk,),
        in_specs=[
            pl.BlockSpec((b_blk, c_in, flat_len), lambda b: (b, 0, 0)),
            pl.BlockSpec((c_out, taps * c_pad), lambda b: (0, 0)),
            pl.BlockSpec((c_out, 1), lambda b: (0, 0)),
        ],
        out_specs=pl.BlockSpec((b_blk, c_out, hwp), lambda b: (b, 0, 0)),
        scratch_shapes=[pltpu.VMEM((taps * c_pad, hwp), compute_dtype)],
        compiler_params=pltpu.CompilerParams(
            dimension_semantics=("parallel",),
            allow_input_fusion=[True, False, False],
        ),
    )(x_flat, w2d, b_eff)

    # Strip the (wp - w_out) discard columns per output row (kept because W_out < 128,
    # where native-width tiles would mean narrow masked stores).  Result is NCHW already.
    out = out_wide.reshape(n, c_out, h_out, wp)[:, :, :, :w_out]
    return out


def _reference(x_nchw, w_dw, b_dw, w_pw, b_pw, *, kernel_size, padding, stride):
    """Pure-JAX reference replicating the PyTorch module semantics."""
    c_in = x_nchw.shape[1]
    c_out = w_pw.shape[0]
    kh = kw = kernel_size
    dw = lax.conv_general_dilated(
        x_nchw, w_dw.reshape(c_in, 1, kh, kw),
        window_strides=(stride, stride),
        padding=((padding, padding), (padding, padding)),
        feature_group_count=c_in,
        dimension_numbers=("NCHW", "OIHW", "NCHW"))
    dw = dw + b_dw.reshape(1, c_in, 1, 1)
    pw = lax.conv_general_dilated(
        dw, w_pw.reshape(c_out, c_in, 1, 1),
        window_strides=(1, 1), padding="VALID",
        dimension_numbers=("NCHW", "OIHW", "NCHW"))
    return pw + b_pw.reshape(1, c_out, 1, 1)


if __name__ == "__main__":
    # Module config (synthetic, deterministic init).
    dim_in, dim_out = 4, 8
    kernel_size, padding, stride = 3, 1, 1
    N, H, W = 2, 16, 16

    key = jax.random.PRNGKey(0)
    kx, k1, k2, k3, k4 = jax.random.split(key, 5)

    x = jax.random.normal(kx, (N, dim_in, H, W), jnp.float32)

    # Parameter shapes follow nn.Conv2d: depthwise (C_in,1,kh,kw), pointwise (C_out,C_in,1,1).
    fan_dw = kernel_size * kernel_size
    w_dw = jax.random.uniform(k1, (dim_in, kernel_size, kernel_size),
                              jnp.float32, -1.0, 1.0) / jnp.sqrt(fan_dw)
    b_dw = jax.random.uniform(k2, (dim_in,), jnp.float32, -1.0, 1.0) / jnp.sqrt(fan_dw)
    w_pw = jax.random.uniform(k3, (dim_out, dim_in),
                              jnp.float32, -1.0, 1.0) / jnp.sqrt(dim_in)
    b_pw = jax.random.uniform(k4, (dim_out,), jnp.float32, -1.0, 1.0) / jnp.sqrt(dim_in)

    out = depthwise_conv2d(x, w_dw, b_dw, w_pw, b_pw,
                           kernel_size=kernel_size, padding=padding, stride=stride)
    out = jax.block_until_ready(out)

    ref = _reference(x, w_dw, b_dw, w_pw, b_pw,
                     kernel_size=kernel_size, padding=padding, stride=stride)
    assert out.shape == ref.shape, (out.shape, ref.shape)
    assert jnp.allclose(out, ref, atol=1e-4, rtol=1e-4), float(jnp.max(jnp.abs(out - ref)))

    print("KERNEL_OK")
</pallas_src>

<mosaic_0001>
module attributes {stable_mosaic.version = 11 : i64} {
  func.func @kernel(%arg0: i32, %arg1: memref<1x4x342xf32, #tpu.memory_space<vmem>>, %arg2: memref<8x72xf32, #tpu.memory_space<vmem>>, %arg3: memref<8x1xf32, #tpu.memory_space<vmem>>, %arg4: memref<1x8x288xf32, #tpu.memory_space<vmem>>, %arg5: memref<72x288xf32, #tpu.memory_space<vmem>>) attributes {dimension_semantics = [#tpu.dimension_semantics<parallel>], iteration_bounds = array<i64: 2>, scalar_prefetch = 0 : i64, scratch_operands = 1 : i64, tpu.core_type = #tpu.core_type<tc>, window_params = [{transform_indices = @transform_0, window_bounds = array<i64: 1, 4, 342>}, {pipeline_mode = #tpu.pipeline_mode<synchronous>, transform_indices = @transform_1, window_bounds = array<i64: 8, 72>}, {pipeline_mode = #tpu.pipeline_mode<synchronous>, transform_indices = @transform_2, window_bounds = array<i64: 8, 1>}, {transform_indices = @transform_3, window_bounds = array<i64: 1, 8, 288>}]} {
    %cst = arith.constant 0.000000e+00 : f32
    %0 = vector.broadcast %cst : f32 to vector<72x288xf32>
    %c0 = arith.constant 0 : index
    %c0_0 = arith.constant 0 : index
    %1 = vector.load %arg5[%c0, %c0_0] : memref<72x288xf32, #tpu.memory_space<vmem>>, vector<72x288xf32>
    tpu.vector_store %arg5[%c0, %c0_0], %0 {strides = array<i32>} : memref<72x288xf32, #tpu.memory_space<vmem>>, vector<72x288xf32>,
    %c0_1 = arith.constant 0 : index
    %c0_2 = arith.constant 0 : index
    %2 = vector.load %arg2[%c0_1, %c0_2] : memref<8x72xf32, #tpu.memory_space<vmem>>, vector<8x72xf32>
    %c0_3 = arith.constant 0 : index
    %c0_4 = arith.constant 0 : index
    %3 = vector.load %arg3[%c0_3, %c0_4] : memref<8x1xf32, #tpu.memory_space<vmem>>, vector<8x1xf32>
    %c0_5 = arith.constant 0 : index
    %c0_6 = arith.constant 0 : index
    %c0_7 = arith.constant 0 : index
    %4 = vector.load %arg1[%c0_5, %c0_6, %c0_7] : memref<1x4x342xf32, #tpu.memory_space<vmem>>, vector<1x4x288xf32>
    %5 = vector.shape_cast %4 : vector<1x4x288xf32> to vector<4x288xf32>
    %c0_8 = arith.constant 0 : index
    %c0_9 = arith.constant 0 : index
    %6 = vector.load %arg5[%c0_8, %c0_9] : memref<72x288xf32, #tpu.memory_space<vmem>>, vector<4x288xf32>
    tpu.vector_store %arg5[%c0_8, %c0_9], %5 {strides = array<i32>} : memref<72x288xf32, #tpu.memory_space<vmem>>, vector<4x288xf32>,
    %c0_10 = arith.constant 0 : index
    %c0_11 = arith.constant 0 : index
    %c1 = arith.constant 1 : index
    %7 = vector.load %arg1[%c0_10, %c0_11, %c1] : memref<1x4x342xf32, #tpu.memory_space<vmem>>, vector<1x4x288xf32>
    %8 = vector.shape_cast %7 : vector<1x4x288xf32> to vector<4x288xf32>
    %c8 = arith.constant 8 : index
    %c0_12 = arith.constant 0 : index
    %9 = vector.load %arg5[%c8, %c0_12] : memref<72x288xf32, #tpu.memory_space<vmem>>, vector<4x288xf32>
    tpu.vector_store %arg5[%c8, %c0_12], %8 {strides = array<i32>} : memref<72x288xf32, #tpu.memory_space<vmem>>, vector<4x288xf32>,
    %c0_13 = arith.constant 0 : index
    %c0_14 = arith.constant 0 : index
    %c2 = arith.constant 2 : index
    %10 = vector.load %arg1[%c0_13, %c0_14, %c2] : memref<1x4x342xf32, #tpu.memory_space<vmem>>, vector<1x4x288xf32>
    %11 = vector.shape_cast %10 : vector<1x4x288xf32> to vector<4x288xf32>
    %c16 = arith.constant 16 : index
    %c0_15 = arith.constant 0 : index
    %12 = vector.load %arg5[%c16, %c0_15] : memref<72x288xf32, #tpu.memory_space<vmem>>, vector<4x288xf32>
    tpu.vector_store %arg5[%c16, %c0_15], %11 {strides = array<i32>} : memref<72x288xf32, #tpu.memory_space<vmem>>, vector<4x288xf32>,
    %c0_16 = arith.constant 0 : index
    %c0_17 = arith.constant 0 : index
    %c18 = arith.constant 18 : index
    %13 = vector.load %arg1[%c0_16, %c0_17, %c18] : memref<1x4x342xf32, #tpu.memory_space<vmem>>, vector<1x4x288xf32>
    %14 = vector.shape_cast %13 : vector<1x4x288xf32> to vector<4x288xf32>
    %c24 = arith.constant 24 : index
    %c0_18 = arith.constant 0 : index
    %15 = vector.load %arg5[%c24, %c0_18] : memref<72x288xf32, #tpu.memory_space<vmem>>, vector<4x288xf32>
    tpu.vector_store %arg5[%c24, %c0_18], %14 {strides = array<i32>} : memref<72x288xf32, #tpu.memory_space<vmem>>, vector<4x288xf32>,
    %c0_19 = arith.constant 0 : index
    %c0_20 = arith.constant 0 : index
    %c19 = arith.constant 19 : index
    %16 = vector.load %arg1[%c0_19, %c0_20, %c19] : memref<1x4x342xf32, #tpu.memory_space<vmem>>, vector<1x4x288xf32>
    %17 = vector.shape_cast %16 : vector<1x4x288xf32> to vector<4x288xf32>
    %c32 = arith.constant 32 : index
    %c0_21 = arith.constant 0 : index
    %18 = vector.load %arg5[%c32, %c0_21] : memref<72x288xf32, #tpu.memory_space<vmem>>, vector<4x288xf32>
    tpu.vector_store %arg5[%c32, %c0_21], %17 {strides = array<i32>} : memref<72x288xf32, #tpu.memory_space<vmem>>, vector<4x288xf32>,
    %c0_22 = arith.constant 0 : index
    %c0_23 = arith.constant 0 : index
    %c20 = arith.constant 20 : index
    %19 = vector.load %arg1[%c0_22, %c0_23, %c20] : memref<1x4x342xf32, #tpu.memory_space<vmem>>, vector<1x4x288xf32>
    %20 = vector.shape_cast %19 : vector<1x4x288xf32> to vector<4x288xf32>
    %c40 = arith.constant 40 : index
    %c0_24 = arith.constant 0 : index
    %21 = vector.load %arg5[%c40, %c0_24] : memref<72x288xf32, #tpu.memory_space<vmem>>, vector<4x288xf32>
    tpu.vector_store %arg5[%c40, %c0_24], %20 {strides = array<i32>} : memref<72x288xf32, #tpu.memory_space<vmem>>, vector<4x288xf32>,
    %c0_25 = arith.constant 0 : index
    %c0_26 = arith.constant 0 : index
    %c36 = arith.constant 36 : index
    %22 = vector.load %arg1[%c0_25, %c0_26, %c36] : memref<1x4x342xf32, #tpu.memory_space<vmem>>, vector<1x4x288xf32>
    %23 = vector.shape_cast %22 : vector<1x4x288xf32> to vector<4x288xf32>
    %c48 = arith.constant 48 : index
    %c0_27 = arith.constant 0 : index
    %24 = vector.load %arg5[%c48, %c0_27] : memref<72x288xf32, #tpu.memory_space<vmem>>, vector<4x288xf32>
    tpu.vector_store %arg5[%c48, %c0_27], %23 {strides = array<i32>} : memref<72x288xf32, #tpu.memory_space<vmem>>, vector<4x288xf32>,
    %c0_28 = arith.constant 0 : index
    %c0_29 = arith.constant 0 : index
    %c37 = arith.constant 37 : index
    %25 = vector.load %arg1[%c0_28, %c0_29, %c37] : memref<1x4x342xf32, #tpu.memory_space<vmem>>, vector<1x4x288xf32>
    %26 = vector.shape_cast %25 : vector<1x4x288xf32> to vector<4x288xf32>
    %c56 = arith.constant 56 : index
    %c0_30 = arith.constant 0 : index
    %27 = vector.load %arg5[%c56, %c0_30] : memref<72x288xf32, #tpu.memory_space<vmem>>, vector<4x288xf32>
    tpu.vector_store %arg5[%c56, %c0_30], %26 {strides = array<i32>} : memref<72x288xf32, #tpu.memory_space<vmem>>, vector<4x288xf32>,
    %c0_31 = arith.constant 0 : index
    %c0_32 = arith.constant 0 : index
    %c38 = arith.constant 38 : index
    %28 = vector.load %arg1[%c0_31, %c0_32, %c38] : memref<1x4x342xf32, #tpu.memory_space<vmem>>, vector<1x4x288xf32>
    %29 = vector.shape_cast %28 : vector<1x4x288xf32> to vector<4x288xf32>
    %c64 = arith.constant 64 : index
    %c0_33 = arith.constant 0 : index
    %30 = vector.load %arg5[%c64, %c0_33] : memref<72x288xf32, #tpu.memory_space<vmem>>, vector<4x288xf32>
    tpu.vector_store %arg5[%c64, %c0_33], %29 {strides = array<i32>} : memref<72x288xf32, #tpu.memory_space<vmem>>, vector<4x288xf32>,
    %c0_34 = arith.constant 0 : index
    %c0_35 = arith.constant 0 : index
    %31 = vector.load %arg5[%c0_34, %c0_35] : memref<72x288xf32, #tpu.memory_space<vmem>>, vector<72x288xf32>
    %cst_36 = arith.constant dense<0.000000e+00> : vector<8x288xf32>
    %32 = tpu.matmul %2, %31, %cst_36 {dimension_numbers = #tpu.dot_dimension_numbers<[1], [0], [0], [1], [0, 0, 1, 1], [], []>} : vector<8x72xf32>, vector<72x288xf32>, vector<8x288xf32> -> vector<8x288xf32>
    %33 = vector.broadcast %3 : vector<8x1xf32> to vector<8x288xf32>
    %34 = arith.addf %32, %33 : vector<8x288xf32>
    %c0_37 = arith.constant 0 : index
    %c0_38 = arith.constant 0 : index
    %c0_39 = arith.constant 0 : index
    %35 = vector.load %arg4[%c0_37, %c0_38, %c0_39] : memref<1x8x288xf32, #tpu.memory_space<vmem>>, vector<1x8x288xf32>
    %36 = vector.shape_cast %35 : vector<1x8x288xf32> to vector<8x288xf32>
    %37 = vector.shape_cast %34 : vector<8x288xf32> to vector<1x8x288xf32>
    tpu.vector_store %arg4[%c0_37, %c0_38, %c0_39], %37 {strides = array<i32>} : memref<1x8x288xf32, #tpu.memory_space<vmem>>, vector<1x8x288xf32>,
    return
  }
  func.func @transform_0(%arg0: i32) -> (i32, i32, i32) {
    %c0_i32 = arith.constant 0 : i32
    %c0_i32_0 = arith.constant 0 : i32
    %c0_i32_1 = arith.constant 0 : i32
    return %arg0, %c0_i32, %c0_i32_0 : i32, i32, i32
  }
  func.func @transform_1(%arg0: i32) -> (i32, i32) {
    %c0_i32 = arith.constant 0 : i32
    %c0_i32_0 = arith.constant 0 : i32
    %c0_i32_1 = arith.constant 0 : i32
    return %c0_i32, %c0_i32_0 : i32, i32
  }
  func.func @transform_2(%arg0: i32) -> (i32, i32) {
    %c0_i32 = arith.constant 0 : i32
    %c0_i32_0 = arith.constant 0 : i32
    %c0_i32_1 = arith.constant 0 : i32
    return %c0_i32, %c0_i32_0 : i32, i32
  }
  func.func @transform_3(%arg0: i32) -> (i32, i32, i32) {
    %c0_i32 = arith.constant 0 : i32
    %c0_i32_0 = arith.constant 0 : i32
    %c0_i32_1 = arith.constant 0 : i32
    return %arg0, %c0_i32, %c0_i32_0 : i32, i32, i32
  }
}

</mosaic_0001>

<bundles_post_ra>
// kernel: depthwise_conv2d.1
= control target key start
LH: loop header
LB: loop body
LE: loop exit
PB: predicated region body
PF: predicated region fallthrough
CT: control target
= control target key end

     0   :  { %s643_s12 = smov 0   ;;  %s774_s0 = inlined_call_operand.vmem [shape: f32[2,4,342], index: 0, kind: input, shape index: {}]   ;;  %s775_s1 = inlined_call_operand.vmem [shape: f32[8,72], index: 1, kind: input, shape index: {}]   ;;  %s776_s2 = inlined_call_operand.vmem [shape: f32[8,1], index: 2, kind: input, shape index: {}]   ;;  %s777_s3 = inlined_call_operand.vmem [shape: f32[2,8,288], index: 3, kind: output, shape index: {}]  }
   0x1 LB: > { %s572_s13 = sadd.s32 4294967295, %s611_s12   ;;  %p576_p0 = scmp.ge.s32.totalorder %s611_s12, 1  ;;  %s611_s12 = sphi %s643_s12, %s13_s12  }
   0x2   : > { %p137_p1 = scmp.lt.s32.totalorder %s611_s12, 3 }
   0x4   : > { %p138_p2 = pnand %p576_p0, %p137_p1 }
   0x5   : > { %p161_p3 = scmp.lt.s32.totalorder (!%p138_p2), %s572_s13, 1  ;;  %s613_s18 = smov (!%p138_p2), 126  }
   0x6   : > { %141 = sbr.rel (%p138_p2) target bundleno = 380 (0x17c), region = 32  ;;  %s614_s19 = smov (!%p138_p2), 110  }
   0x7   : > { %s615_s20 = smov (!%p138_p2), 109   ;;  %s616_s21 = smov (!%p138_p2), 108  }
   0x8   : > { %s617_s22 = smov (!%p138_p2), 92   ;;  %s618_s23 = smov (!%p138_p2), 127  }
   0x9   : > { %s619_s24 = smov (!%p138_p2), 91   ;;  %s620_s25 = smov (!%p138_p2), 90  }
   0xb   : > { %s779_s13 = smov (!%p161_p3, %s572_s13), 1  ;;  %vm173_vm0 = vcmask 261120   ;;  %v621_v35 = vmov 0.0   ;;  %vm216_vm1 = vcmask 257024   ;;  %vm334_vm2 = vcmask 883712  }
   0xc   : > { %s584_s14 = smul.u32 12, %s779_s13  ;;  %180 = vst.msk [vmem:[#allocation2 + $0x40] sm:$0xff] %vm173_vm0, %v621_v35  ;;  %vm359_vm3 = vcmask 752640   ;;  %vm234_vm4 = vcmask 1039360   ;;  %vm384_vm5 = vcmask 744448   ;;  %vm309_vm6 = vcmask 891904  }
   0xd   : > { %171 = vst [vmem:[#allocation2] sm:$0xff] %v621_v35  ;;  %vm409_vm7 = vcmask 736256   ;;  %vm284_vm8 = vcmask 900096   ;;  %vm259_vm9 = vcmask 1031168   ;;  %vm450_vm10 = vcmask 588800   ;;  %s585_s30 = smul.u32 24, %s779_s13 }
   0xe   : > { %s657_s17 = scalar_lea.vmem %s774_s0, %s584_s14  ;;  %172 = vst [vmem:[#allocation2 + $0x8] sm:$0xff] %v621_v35 }
   0xf   : > { %v660_v0 = vld [vmem:[%s657_s17] sm:$0xff]  ;;  %v202_v1 = vld [vmem:[%s657_s17 + $0x8] sm:$0xf]  ;;  %174 = vst.msk [vmem:[#allocation2 + $0x10] sm:$0xff] %vm173_vm0, %v621_v35  ;;  %s170_s6 = scalar_lea.vmem %s777_s3, %s585_s30 }
  0x10   : > { %205 = vst [vmem:[#allocation1] ss:$2 sm:$0xff] %v660_v0  ;;  %v219_v2 = vld [vmem:[%s657_s17 + $0x8] sm:$0xf] }
  0x11   : > { %207 = vst [vmem:[#allocation1 + $0x10] ss:$2 sm:$0xff] %v202_v1  ;;  %v244_v6 = vld [vmem:[%s657_s17 + $0x8] sm:$0xf] }
  0x12   : > { %v269_v10 = vld [vmem:[%s657_s17 + $0x8] sm:$0xf]  ;;  %175 = vst [vmem:[#allocation2 + $0x18] sm:$0xff] %v621_v35 }
  0x13   : > { %v294_v14 = vld [vmem:[%s657_s17 + $0x8] sm:$0xf]  ;;  %176 = vst [vmem:[#allocation2 + $0x20] sm:$0xff] %v621_v35 }
  0x14   : > { %v319_v18 = vld [vmem:[%s657_s17 + $0x8] sm:$0xf]  ;;  %177 = vst.msk [vmem:[#allocation2 + $0x28] sm:$0xff] %vm173_vm0, %v621_v35 }
  0x15   : > { %v344_v22 = vld [vmem:[%s657_s17 + $0x8] sm:$0xf]  ;;  %178 = vst [vmem:[#allocation2 + $0x30] sm:$0xff] %v621_v35 }
  0x16   : > { %v369_v26 = vld [vmem:[%s657_s17 + $0x8] sm:$0xf]  ;;  %179 = vst [vmem:[#allocation2 + $0x38] sm:$0xff] %v621_v35 }
  0x17   : > { %v665_v3 = vld.sshfl [vmem:[#allocation1] sm:$0xff pattern:$0x75316420]  ;;  %v667_v4 = vld.sshfl [vmem:[#allocation1 + $0x8] sm:$0xff pattern:$0x75316420] }
  0x18   : > { %222 = vst [vmem:[#allocation1] ss:$2 sm:$0xff] %v660_v0  ;;  %v670_v5 = vld.sshfl [vmem:[#allocation1 + $0x10] sm:$0xff pattern:$0x75316420] }
  0x19   : > { %224 = vst [vmem:[#allocation1 + $0x10] ss:$2 sm:$0xff] %v219_v2  ;;  %v394_v30 = vld [vmem:[%s657_s17 + $0x8] sm:$0xf] }
  0x1a   : > { %181 = vst [vmem:[#allocation2 + $0x48] sm:$0xff] %v621_v35 }
  0x1b   : > { %182 = vst [vmem:[#allocation2 + $0x50] sm:$0xff] %v621_v35 }
  0x1c   : > { %183 = vst.msk [vmem:[#allocation2 + $0x58] sm:$0xff] %vm173_vm0, %v621_v35 }
  0x1d   : > { %184 = vst [vmem:[#allocation2 + $0x60] sm:$0xff] %v621_v35 }
  0x1e   : > { %185 = vst [vmem:[#allocation2 + $0x68] sm:$0xff] %v621_v35 }
  0x1f   : > { %v673_v7 = vld.sshfl [vmem:[#allocation1] sm:$0xff pattern:$0x75316420]  ;;  %v675_v8 = vld.sshfl [vmem:[#allocation1 + $0x8] sm:$0xff pattern:$0x75316420] }
  0x20   : > { %247 = vst [vmem:[#allocation1] ss:$2 sm:$0xff] %v660_v0  ;;  %v227_v9 = vld.sshfl [vmem:[#allocation1 + $0x10] sm:$0xff pattern:$0x75316420] }
  0x21   : > { %249 = vst [vmem:[#allocation1 + $0x10] ss:$2 sm:$0xff] %v244_v6 }
  0x22   : > { %186 = vst.msk [vmem:[#allocation2 + $0x70] sm:$0xff] %vm173_vm0, %v621_v35 }
  0x23   : > { %187 = vst [vmem:[#allocation2 + $0x78] sm:$0xff] %v621_v35 }
  0x24   : > { %188 = vst [vmem:[#allocation2 + $0x80] sm:$0xff] %v621_v35 }
  0x25   : > { %189 = vst.msk [vmem:[#allocation2 + $0x88] sm:$0xff] %vm173_vm0, %v621_v35 }
  0x26   : > { %190 = vst [vmem:[#allocation2 + $0x90] sm:$0xff] %v621_v35 }
  0x27   : > { %v679_v11 = vld.sshfl [vmem:[#allocation1] sm:$0xff pattern:$0x75316420]  ;;  %v681_v12 = vld.sshfl [vmem:[#allocation1 + $0x8] sm:$0xff pattern:$0x75316420] }
  0x28   : > { %272 = vst [vmem:[#allocation1] ss:$2 sm:$0xff] %v660_v0  ;;  %v252_v13 = vld.sshfl [vmem:[#allocation1 + $0x10] sm:$0xff pattern:$0x75316420] }
  0x29   : > { %257 = vrot.lane.b32.xlu2 %v252_v13, %s613_s18  ;;  %274 = vst [vmem:[#allocation1 + $0x10] ss:$2 sm:$0xff] %v269_v10 }
  0x2a   : > { %191 = vst [vmem:[#allocation2 + $0x98] sm:$0xff] %v621_v35 }
  0x2b   : > { %192 = vst.msk [vmem:[#allocation2 + $0xa0] sm:$0xff] %vm173_vm0, %v621_v35 }
  0x2c   : > { %193 = vst [vmem:[#allocation2 + $0xa8] sm:$0xff] %v621_v35 }
  0x2d   : > { %194 = vst [vmem:[#allocation2 + $0xb0] sm:$0xff] %v621_v35 }
  0x2e   : > { %195 = vst.msk [vmem:[#allocation2 + $0xb8] sm:$0xff] %vm173_vm0, %v621_v35 }
  0x2f   : > { %v686_v15 = vld.sshfl [vmem:[#allocation1] sm:$0xff pattern:$0x75316420]  ;;  %v688_v16 = vld.sshfl [vmem:[#allocation1 + $0x8] sm:$0xff pattern:$0x75316420] }
  0x30   : > { %297 = vst [vmem:[#allocation1] ss:$2 sm:$0xff] %v660_v0  ;;  %v277_v17 = vld.sshfl [vmem:[#allocation1 + $0x10] sm:$0xff pattern:$0x75316420] }
  0x31   : > { %299 = vst [vmem:[#allocation1 + $0x10] ss:$2 sm:$0xff] %v294_v14  ;;  %282 = vrot.lane.b32.xlu2 %v277_v17, %s614_s19 }
  0x32   : > { %196 = vst [vmem:[#allocation2 + $0xc0] sm:$0xff] %v621_v35 }
  0x33   : > { %197 = vst [vmem:[#allocation2 + $0xc8] sm:$0xff] %v621_v35 }
  0x34   : > { %198 = vst.msk [vmem:[#allocation2 + $0xd0] sm:$0xff] %vm173_vm0, %v621_v35 }
  0x35   : > { %214 = vst [vmem:[#allocation2] sm:$0xf] %v665_v3 }
  0x36   : > { %215 = vst [vmem:[#allocation2 + $0x8] sm:$0xf] %v667_v4  ;;  %v200_v4 = vld [vmem:[%s776_s2] sm:$0xff] }
  0x37   : > { %v693_v19 = vld.sshfl [vmem:[#allocation1] sm:$0xff pattern:$0x75316420]  ;;  %v301_v20 = vld.sshfl [vmem:[#allocation1 + $0x8] sm:$0xff pattern:$0x75316420] }
  0x38   : > { %322 = vst [vmem:[#allocation1] ss:$2 sm:$0xff] %v660_v0  ;;  %v302_v21 = vld.sshfl [vmem:[#allocation1 + $0x10] sm:$0xff pattern:$0x75316420] }
  0x39   : > { %324 = vst [vmem:[#allocation1 + $0x10] ss:$2 sm:$0xff] %v319_v18  ;;  %307 = vrot.lane.b32.xlu2 %v302_v21, %s615_s20 }
  0x3a   : > { %217 = vst.msk [vmem:[#allocation2 + $0x10] sm:$0xf] %vm216_vm1, %v670_v5 }
  0x3f   : > { %v326_v23 = vld.sshfl [vmem:[#allocation1 + $0x8] sm:$0xff pattern:$0x75316420]  ;;  %v325_v24 = vld.sshfl [vmem:[#allocation1] sm:$0xff pattern:$0x75316420] }
  0x40   : > { %330 = vrot.lane.b32.xlu1 %v326_v23, %s616_s21  ;;  %328 = vrot.lane.b32.xlu0 %v325_v24, %s616_s21  ;;  %v327_v25 = vld.sshfl [vmem:[#allocation1 + $0x10] sm:$0xff pattern:$0x75316420]  ;;  %347 = vst [vmem:[#allocation1] ss:$2 sm:$0xff] %v660_v0 }
  0x41   : > { %349 = vst [vmem:[#allocation1 + $0x10] ss:$2 sm:$0xff] %v344_v22  ;;  %332 = vrot.lane.b32.xlu2 %v327_v25, %s616_s21 }
  0x47   : > { %v350_v27 = vld.sshfl [vmem:[#allocation1] sm:$0xff pattern:$0x75316420]  ;;  %v351_v28 = vld.sshfl [vmem:[#allocation1 + $0x8] sm:$0xff pattern:$0x75316420] }
  0x48   : > { %v352_v29 = vld.sshfl [vmem:[#allocation1 + $0x10] sm:$0xff pattern:$0x75316420]  ;;  %353 = vrot.lane.b32.xlu0 %v350_v27, %s617_s22  ;;  %372 = vst [vmem:[#allocation1] ss:$2 sm:$0xff] %v660_v0  ;;  %v420_v27 = vld [vmem:[#allocation2 + $0x10] sm:$0xff] }
  0x49   : > { %374 = vst [vmem:[#allocation1 + $0x10] ss:$2 sm:$0xff] %v369_v26  ;;  %357 = vrot.lane.b32.xlu1 %v352_v29, %s617_s22  ;;  %232 = vrot.lane.b32.xlu2 %v227_v9, %s618_s23 }
  0x4f   : > { %v376_v31 = vld.sshfl [vmem:[#allocation1 + $0x8] sm:$0xff pattern:$0x75316420]  ;;  %v375_v32 = vld.sshfl [vmem:[#allocation1] sm:$0xff pattern:$0x75316420] }
  0x50   : > { %v377_v33 = vld.sshfl [vmem:[#allocation1 + $0x10] sm:$0xff pattern:$0x75316420]  ;;  %397 = vst [vmem:[#allocation1] ss:$2 sm:$0xff] %v660_v0 }
  0x51   : > { %355 = vrot.lane.b32.xlu1 %v351_v28, %s617_s22  ;;  %399 = vst [vmem:[#allocation1 + $0x10] ss:$2 sm:$0xff] %v394_v30  ;;  %382 = vrot.lane.b32.xlu0 %v377_v33, %s619_s24 }
  0x57   : > { %v401_v34 = vld.sshfl [vmem:[#allocation1 + $0x8] sm:$0xff pattern:$0x75316420]  ;;  %v400_v37 = vld.sshfl [vmem:[#allocation1] sm:$0xff pattern:$0x75316420] }
  0x58   : > { %405 = vrot.lane.b32.xlu2 %v401_v34, %s620_s25  ;;  %v402_v36 = vld.sshfl [vmem:[#allocation1 + $0x10] sm:$0xff pattern:$0x75316420]  ;;  %v199_v34 = vld [vmem:[%s775_s1] sm:$0xff] }
  0x59   : > { %380 = vrot.lane.b32.xlu1 %v376_v31, %s619_s24  ;;  %378 = vrot.lane.b32.xlu0 %v375_v32, %s619_s24 }
  0x60   : > { %253 = vrot.lane.b32.xlu2 %v679_v11, %s613_s18 }
  0x61   : > { %305 = vrot.lane.b32.xlu1 %v301_v20, %s615_s20  ;;  %407 = vrot.lane.b32.xlu0 %v402_v36, %s620_s25 }
  0x68   : > { %230 = vrot.lane.b32.xlu2 %v675_v8, %s618_s23 }
  0x69   : > { %303 = vrot.lane.b32.xlu0 %v693_v19, %s615_s20  ;;  %403 = vrot.lane.b32.xlu1 %v400_v37, %s620_s25 }
  0x71   : > { %278 = vrot.lane.b32.xlu0 %v686_v15, %s614_s19  ;;  %280 = vrot.lane.b32.xlu1 %v688_v16, %s614_s19 }
  0x79   : > { %255 = vrot.lane.b32.xlu0 %v681_v12, %s613_s18  ;;  %228 = vrot.lane.b32.xlu1 %v673_v7, %s618_s23  ;;  %v622_v7 = vmov 0  }
  0x7a   : > { %604 = vset.pattern.permute.xlu0 %v622_v7 }
  0x81   : > { %447 = vperm.xlu0 %604, %v200_v4  }
  0x83   : > { %v732_v38 = vpop.permute.xlu2 %257 }
  0x84   : > { %267 = vst.msk [vmem:[#allocation2 + $0x40] sm:$0xf] %vm216_vm1, %v732_v38 }
  0x8b   : > { %v736_v39 = vpop.permute.xlu2 %282  ;;  %v426_v24 = vld [vmem:[#allocation2 + $0x40] sm:$0xff] }
  0x8c   : > { %292 = vst.msk [vmem:[#allocation2 + $0x58] sm:$0xf] %vm216_vm1, %v736_v39 }
  0x93   : > { %v308_v40 = vpop.permute.xlu2 %307  ;;  %v429_v22 = vld [vmem:[#allocation2 + $0x58] sm:$0xff] }
  0x94   : > { %317 = vst.msk [vmem:[#allocation2 + $0x70] sm:$0xf] %vm216_vm1, %v308_v40 }
  0x9b   : > { %v333_v41 = vpop.permute.xlu2 %332  ;;  %v432_v17 = vld [vmem:[#allocation2 + $0x70] sm:$0xff] }
  0x9c   : > { %342 = vst.msk [vmem:[#allocation2 + $0x88] sm:$0xf] %vm216_vm1, %v333_v41 }
  0xa3   : > { %v233_v42 = vpop.permute.xlu2 %232  ;;  %v435_v13 = vld [vmem:[#allocation2 + $0x88] sm:$0xff] }
  0xa4   : > { %242 = vst.msk [vmem:[#allocation2 + $0x28] sm:$0xf] %vm216_vm1, %v233_v42 }
  0xab   : > { %v423_v26 = vld [vmem:[#allocation2 + $0x28] sm:$0xff] }
  0xb2   : > { %v331_v43 = vpop.permute.xlu1 %330  ;;  %v329_v44 = vpop.permute.xlu0 %328 }
  0xb3   : > { %v335_v45 = vsel %vm334_vm2, %v329_v44, %v331_v43  ;;  %v336_v46 = vsel %vm334_vm2, %v331_v43, %v333_v41  ;;  %v406_v47 = vpop.permute.xlu2 %405  ;;  %v418_v41 = vld [vmem:[#allocation2] sm:$0xff]  ;;  %v419_v43 = vld [vmem:[#allocation2 + $0x8] sm:$0xff] }
  0xb4   : > { %340 = vst [vmem:[#allocation2 + $0x78] sm:$0xf] %v335_v45 }
  0xb5   : > { %341 = vst [vmem:[#allocation2 + $0x80] sm:$0xf] %v336_v46 }
  0xba   : > { %v354_v48 = vpop.permute.xlu0 %353 }
  0xbb   : > { %v358_v49 = vpop.permute.xlu1 %357  ;;  %v743_v50 = vpop.permute.xlu2 %253  ;;  %v433_v29 = vld [vmem:[#allocation2 + $0x78] sm:$0xff] }
  0xbc   : > { %367 = vst.msk [vmem:[#allocation2 + $0xa0] sm:$0xf] %vm216_vm1, %v358_v49  ;;  %v434_v15 = vld [vmem:[#allocation2 + $0x80] sm:$0xff] }
  0xc3   : > { %v356_v51 = vpop.permute.xlu1 %355  ;;  %v383_v52 = vpop.permute.xlu0 %382  ;;  %v438_v11 = vld [vmem:[#allocation2 + $0xa0] sm:$0xff] }
  0xc4   : > { %v360_v53 = vsel %vm359_vm3, %v354_v48, %v356_v51  ;;  %v361_v54 = vsel %vm359_vm3, %v356_v51, %v358_v49  ;;  %392 = vst.msk [vmem:[#allocation2 + $0xb8] sm:$0xf] %vm216_vm1, %v383_v52  ;;  %v747_v55 = vpop.permute.xlu2 %230 }
  0xc5   : > { %365 = vst [vmem:[#allocation2 + $0x90] sm:$0xf] %v360_v53  ;;  %v236_v56 = vsel %vm234_vm4, %v747_v55, %v233_v42 }
  0xc6   : > { %366 = vst [vmem:[#allocation2 + $0x98] sm:$0xf] %v361_v54 }
  0xc7   : > { %241 = vst [vmem:[#allocation2 + $0x20] sm:$0xf] %v236_v56 }
  0xcb   : > { %v381_v57 = vpop.permute.xlu1 %380  ;;  %v379_v58 = vpop.permute.xlu0 %378  ;;  %v441_v9 = vld [vmem:[#allocation2 + $0xb8] sm:$0xff] }
  0xcc   : > { %v386_v59 = vsel %vm384_vm5, %v381_v57, %v383_v52  ;;  %v385_v60 = vsel %vm384_vm5, %v379_v58, %v381_v57  ;;  %v436_v25 = vld [vmem:[#allocation2 + $0x90] sm:$0xff] }
  0xcd   : > { %391 = vst [vmem:[#allocation2 + $0xb0] sm:$0xf] %v386_v59  ;;  %v437_v12 = vld [vmem:[#allocation2 + $0x98] sm:$0xff] }
  0xce   : > { %390 = vst [vmem:[#allocation2 + $0xa8] sm:$0xf] %v385_v60  ;;  %v422_v42 = vld [vmem:[#allocation2 + $0x20] sm:$0xff] }
  0xd3   : > { %v306_v61 = vpop.permute.xlu1 %305  ;;  %v408_v62 = vpop.permute.xlu0 %407 }
  0xd4   : > { %v311_v63 = vsel %vm309_vm6, %v306_v61, %v308_v40  ;;  %v411_v0 = vsel %vm409_vm7, %v406_v47, %v408_v62  ;;  %417 = vst.msk [vmem:[#allocation2 + $0xd0] sm:$0xf] %vm216_vm1, %v408_v62  ;;  %v440_v10 = vld [vmem:[#allocation2 + $0xb0] sm:$0xff] }
  0xd5   : > { %316 = vst [vmem:[#allocation2 + $0x68] sm:$0xf] %v311_v63  ;;  %v439_v23 = vld [vmem:[#allocation2 + $0xa8] sm:$0xff] }
  0xd6   : > { %416 = vst [vmem:[#allocation2 + $0xc8] sm:$0xf] %v411_v0 }
  0xdb   : > { %v304_v1 = vpop.permute.xlu0 %303  ;;  %v404_v2 = vpop.permute.xlu1 %403  ;;  %v444_v3 = vld [vmem:[#allocation2 + $0xd0] sm:$0xff] }
  0xdc   : > { %v310_v5 = vsel %vm309_vm6, %v304_v1, %v306_v61  ;;  %v410_v6 = vsel %vm409_vm7, %v404_v2, %v406_v47  ;;  %501 = vmatpush.msra.mxu2 %v444_v3  ;;  %v431_v21 = vld [vmem:[#allocation2 + $0x68] sm:$0xff] }
  0xdd   : > { %315 = vst [vmem:[#allocation2 + $0x60] sm:$0xf] %v310_v5  ;;  %v443_v8 = vld [vmem:[#allocation2 + $0xc8] sm:$0xff] }
  0xde   : > { %415 = vst [vmem:[#allocation2 + $0xc0] sm:$0xf] %v410_v6  ;;  %481 = vmatpush.msra.mxu1 %v443_v8  ;;  %502 = vmatpush.msra.mxu2 %v441_v9 }
  0xe0   : > { %482 = vmatpush.msra.mxu1 %v440_v10  ;;  %503 = vmatpush.msra.mxu2 %v438_v11 }
  0xe2   : > { %483 = vmatpush.msra.mxu1 %v437_v12  ;;  %504 = vmatpush.msra.mxu2 %v435_v13 }
  0xe3   : > { %v279_v14 = vpop.permute.xlu0 %278  ;;  %v281_v16 = vpop.permute.xlu1 %280 }
  0xe4   : > { %484 = vmatpush.msra.mxu1 %v434_v15  ;;  %v285_v18 = vsel %vm284_vm8, %v279_v14, %v281_v16  ;;  %v286_v19 = vsel %vm284_vm8, %v281_v16, %v736_v39  ;;  %505 = vmatpush.msra.mxu2 %v432_v17  ;;  %v430_v35 = vld [vmem:[#allocation2 + $0x60] sm:$0xff] }
  0xe5   : > { %290 = vst [vmem:[#allocation2 + $0x48] sm:$0xf] %v285_v18  ;;  %v442_v20 = vld [vmem:[#allocation2 + $0xc0] sm:$0xff] }
  0xe6   : > { %291 = vst [vmem:[#allocation2 + $0x50] sm:$0xf] %v286_v19  ;;  %461 = vmatpush.msra.mxu0 %v442_v20  ;;  %485 = vmatpush.msra.mxu1 %v431_v21 }
  0xe7   : > { %506 = vmatpush.msra.mxu2 %v429_v22 }
  0xe8   : > { %462 = vmatpush.msra.mxu0 %v439_v23 }
  0xe9   : > { %507 = vmatpush.msra.mxu2 %v426_v24 }
  0xea   : > { %463 = vmatpush.msra.mxu0 %v436_v25 }
  0xeb   : > { %508 = vmatpush.msra.mxu2 %v423_v26  ;;  %v256_v28 = vpop.permute.xlu0 %255  ;;  %v229_v30 = vpop.permute.xlu1 %228 }
  0xec   : > { %v260_v31 = vsel %vm259_vm9, %v743_v50, %v256_v28  ;;  %v261_v32 = vsel %vm259_vm9, %v256_v28, %v732_v38  ;;  %464 = vmatpush.msra.mxu0 %v433_v29  ;;  %v235_v33 = vsel %vm234_vm4, %v229_v30, %v747_v55  ;;  %v427_v37 = vld [vmem:[#allocation2 + $0x48] sm:$0xff] }
  0xed   : > { %265 = vst [vmem:[#allocation2 + $0x30] sm:$0xf] %v260_v31  ;;  %v428_v36 = vld [vmem:[#allocation2 + $0x50] sm:$0xff]  ;;  %509 = vmatpush.msra.mxu2 %v420_v27 }
  0xee   : > { %266 = vst [vmem:[#allocation2 + $0x38] sm:$0xf] %v261_v32  ;;  %465 = vmatpush.msra.mxu0 %v430_v35  ;;  %486 = vmatpush.msra.mxu1 %v428_v36 }
  0xef   : > { %240 = vst [vmem:[#allocation2 + $0x18] sm:$0xf] %v235_v33  ;;  %581 = vmatmul.msk.f32.vlgmr.msra.gmra.mxu2 %vm450_vm10, %v199_v34 }
  0xf0   : > { %466 = vmatpush.msra.mxu0 %v427_v37 }
  0xf3   : > { %v448_v44 = vpop.permute.xlu0 %447 }
  0xf4   : > { %v424_v38 = vld [vmem:[#allocation2 + $0x30] sm:$0xff] }
  0xf5   : > { %467 = vmatpush.msra.mxu0 %v424_v38  ;;  %v425_v39 = vld [vmem:[#allocation2 + $0x38] sm:$0xff] }
  0xf6   : > { %487 = vmatpush.msra.mxu1 %v425_v39  ;;  %v421_v40 = vld [vmem:[#allocation2 + $0x18] sm:$0xff] }
  0xf7   : > { %468 = vmatpush.msra.mxu0 %v421_v40 }
  0xf8   : > { %488 = vmatpush.msra.mxu1 %v422_v42 }
  0xf9   : > { %469 = vmatpush.msra.mxu0 %v418_v41 }
  0xfa   : > { %489 = vmatpush.msra.mxu1 %v419_v43  ;;  %579 = vmatmul.msk.f32.vlgmr.msra.gmra.mxu0 %vm450_vm10, %v199_v34 }
  0xfb   : > { %580 = vmatmul.msk.f32.vlgmr.msra.gmra.mxu1 %vm450_vm10, %v199_v34 }
 0x172   : > { %v511_v45 = vpop.f32.mrf.mxu2 }
 0x173   : > { %v512_v46 = vadd.f32 %v511_v45, %v448_v44 }
 0x175   : > { %516 = vst.msk [vmem:[%s170_s6 + $0x10] sm:$0xff] %vm173_vm0, %v512_v46 }
 0x177   : > { %v471_v47 = vpop.f32.mrf.mxu0 }
 0x178   : > { %v472_v48 = vadd.f32 %v471_v47, %v448_v44  ;;  %v491_v49 = vpop.f32.mrf.mxu1 }
 0x179   : > { %v492_v50 = vadd.f32 %v491_v49, %v448_v44 }
 0x17a   : > { %514 = vst [vmem:[%s170_s6] sm:$0xff] %v472_v48 }
 0x17b   : > { %515 = vst [vmem:[%s170_s6 + $0x8] sm:$0xff] %v492_v50 }
 0x17c PF: > { %s13_s12 = sadd.s32 1, %s611_s12  }
 0x17d   : > { %p10_p4 = scmp.ge.s32.totalorder %s13_s12, 4  }
 0x17f   :  { %12 = sbr.rel (!%p10_p4) target bundleno = 1 (0x1), region = 71 }

</bundles_post_ra>
